<compile_context>
chip_gen: v6e
topology: v6e:2x2x1
jax: 0.10.0
libtpu: 0.0.40
codegen_flags: <defaults>
</compile_context>

<pallas_src>
import functools

import jax
import jax.numpy as jnp
from jax.experimental import pallas as pl
from jax.experimental.pallas import tpu as pltpu


# ---------------------------------------------------------------------------
# Fused encoder kernel: chains every Linear(+LeakyReLU) on-chip.
#   refs layout: x, w1, b1, (wh_i, bh_i) * n_hidden, w_out, b_out, o
# ---------------------------------------------------------------------------
def _make_encoder_kernel(n_hidden, negative_slope):
    def kernel(*refs):
        x_ref = refs[0]
        w1_ref, b1_ref = refs[1], refs[2]
        hidden_refs = refs[3:3 + 2 * n_hidden]
        wo_ref = refs[3 + 2 * n_hidden]
        bo_ref = refs[4 + 2 * n_hidden]
        o_ref = refs[5 + 2 * n_hidden]

        def leaky(v):  # fp32 elementwise (v5e VPU has no bf16 path)
            return jnp.where(v >= 0.0, v, negative_slope * v)

        # Layer 1
        h = jnp.dot(x_ref[...], w1_ref[...], preferred_element_type=jnp.float32)
        h = leaky(h + b1_ref[...])

        # Hidden stack (statically unrolled; n_hidden is a trace-time constant)
        for i in range(n_hidden):
            w_ref = hidden_refs[2 * i]
            b_ref = hidden_refs[2 * i + 1]
            h = jnp.dot(h, w_ref[...], preferred_element_type=jnp.float32)
            h = leaky(h + b_ref[...])

        # Output layer (no activation). wo/bo are pre-padded to a lane-dense
        # width (multiple of 128) so this store is an unmasked vst.
        out = jnp.dot(h, wo_ref[...], preferred_element_type=jnp.float32)
        out = out + bo_ref[...]
        o_ref[...] = out.astype(o_ref.dtype)

    return kernel


def _full_spec(shape):
    # Full-extent block (whole array resident in VMEM; no grid iteration).
    return pl.BlockSpec(shape, lambda: (0,) * len(shape))


def encoder_forward(params, x, *, n_latent, negative_slope=0.2):
    """Fused forward: x (B, C, H, W) -> (B, n_latent)."""
    B = x.shape[0]
    x2d = x.reshape(B, -1).astype(jnp.float32)  # == torch x.view(B, -1)

    w1, b1 = params["l1"]
    hidden = params["hidden"]
    wo, bo = params["out"]
    n_hidden = len(hidden)

    # Pad the final output width up to a multiple of 128 lanes (lane-dense
    # out_spec); extra columns multiply zero weights + zero bias => zeros.
    out_pad = max(128, ((n_latent + 127) // 128) * 128)
    wo_p = jnp.pad(wo, ((0, 0), (0, out_pad - n_latent)))
    bo_p = jnp.pad(bo, ((0, 0), (0, out_pad - n_latent)))

    inputs = [x2d, w1, b1]
    for wh, bh in hidden:
        inputs.extend([wh, bh])
    inputs.extend([wo_p, bo_p])

    kernel = _make_encoder_kernel(n_hidden, negative_slope)

    out_padded = pl.pallas_call(
        kernel,
        out_shape=jax.ShapeDtypeStruct((B, out_pad), jnp.float32),
        in_specs=[_full_spec(a.shape) for a in inputs],
        out_specs=_full_spec((B, out_pad)),
        # Whole problem (< 100 KiB fp32) fits trivially in default scoped VMEM;
        # no grid / tiling needed at these sizes.
        # TODO(synk): for the taper=True / large-width variant, add a (K, N)
        # grid with an accumulator scratch and budget tiles against v7x's
        # 64 MiB VMEM; mark independent grid axes "parallel" for the 2 TCs.
    )(*inputs)

    return out_padded[:, :n_latent]


# ---------------------------------------------------------------------------
# Parameter init (deterministic, mimics torch.nn.Linear default init).
# Weights stored transposed as (in_features, out_features) so y = x @ W + b.
# ---------------------------------------------------------------------------
def init_linear_params(key, in_dim, out_dim):
    kw, kb = jax.random.split(key)
    bound = 1.0 / jnp.sqrt(jnp.float32(in_dim))
    w = jax.random.uniform(kw, (in_dim, out_dim), jnp.float32, -bound, bound)
    b = jax.random.uniform(kb, (1, out_dim), jnp.float32, -bound, bound)
    return w, b


def init_encoder_params(key, im_size, n_latent, n_hidden, nn_width):
    """Non-taper Encoder: l1, n_hidden hidden layers, out."""
    keys = jax.random.split(key, n_hidden + 2)
    params = {"l1": init_linear_params(keys[0], im_size, nn_width)}
    params["hidden"] = [
        init_linear_params(keys[1 + i], nn_width, nn_width) for i in range(n_hidden)
    ]
    params["out"] = init_linear_params(keys[-1], nn_width, n_latent)
    return params
    # TODO(synk): taper=True branch (geometrically tapered widths) not wired
    # up; the same fused kernel applies, only the per-layer width list changes.


# ---------------------------------------------------------------------------
# Pure-JAX reference for correctness check.
# ---------------------------------------------------------------------------
def encoder_forward_ref(params, x):
    def leaky(v):
        return jnp.where(v >= 0.0, v, 0.2 * v)

    B = x.shape[0]
    h = x.reshape(B, -1).astype(jnp.float32)
    w, b = params["l1"]
    h = leaky(h @ w + b)
    for w, b in params["hidden"]:
        h = leaky(h @ w + b)
    w, b = params["out"]
    return h @ w + b


if __name__ == "__main__":
    # Small shapes consistent with the module: 1x8x8 images -> im_size = 64.
    batch = 8
    im_size = 64          # 1 * 8 * 8
    n_latent = 16
    n_hidden = 2
    nn_width = 128

    key = jax.random.PRNGKey(0)
    k_params, k_x = jax.random.split(key)

    params = init_encoder_params(k_params, im_size, n_latent, n_hidden, nn_width)
    x = jax.random.normal(k_x, (batch, 1, 8, 8), jnp.float32)  # NCHW input

    out = encoder_forward(params, x, n_latent=n_latent)
    out = jax.block_until_ready(out)

    ref = encoder_forward_ref(params, x)
    assert out.shape == (batch, n_latent), out.shape
    assert jnp.allclose(out, ref, atol=1e-5, rtol=1e-5), "mismatch vs reference"

    print("KERNEL_OK")
</pallas_src>

<mosaic_0001>
module attributes {stable_mosaic.version = 11 : i64} {
  func.func @kernel(%arg0: memref<8x64xf32, #tpu.memory_space<vmem>>, %arg1: memref<64x128xf32, #tpu.memory_space<vmem>>, %arg2: memref<1x128xf32, #tpu.memory_space<vmem>>, %arg3: memref<128x128xf32, #tpu.memory_space<vmem>>, %arg4: memref<1x128xf32, #tpu.memory_space<vmem>>, %arg5: memref<128x128xf32, #tpu.memory_space<vmem>>, %arg6: memref<1x128xf32, #tpu.memory_space<vmem>>, %arg7: memref<128x128xf32, #tpu.memory_space<vmem>>, %arg8: memref<1x128xf32, #tpu.memory_space<vmem>>, %arg9: memref<8x128xf32, #tpu.memory_space<vmem>>) attributes {dimension_semantics = [], scalar_prefetch = 0 : i64, scratch_operands = 0 : i64, tpu.core_type = #tpu.core_type<tc>} {
    %c0 = arith.constant 0 : index
    %c0_0 = arith.constant 0 : index
    %0 = vector.load %arg0[%c0, %c0_0] : memref<8x64xf32, #tpu.memory_space<vmem>>, vector<8x64xf32>
    %c0_1 = arith.constant 0 : index
    %c0_2 = arith.constant 0 : index
    %1 = vector.load %arg1[%c0_1, %c0_2] : memref<64x128xf32, #tpu.memory_space<vmem>>, vector<64x128xf32>
    %cst = arith.constant dense<0.000000e+00> : vector<8x128xf32>
    %2 = tpu.matmul %0, %1, %cst {dimension_numbers = #tpu.dot_dimension_numbers<[1], [0], [0], [1], [0, 0, 1, 1], [], []>} : vector<8x64xf32>, vector<64x128xf32>, vector<8x128xf32> -> vector<8x128xf32>
    %c0_3 = arith.constant 0 : index
    %c0_4 = arith.constant 0 : index
    %3 = vector.load %arg2[%c0_3, %c0_4] : memref<1x128xf32, #tpu.memory_space<vmem>>, vector<1x128xf32>
    %4 = vector.broadcast %3 : vector<1x128xf32> to vector<8x128xf32>
    %5 = arith.addf %2, %4 : vector<8x128xf32>
    %cst_5 = arith.constant 0.000000e+00 : f32
    %6 = vector.broadcast %cst_5 : f32 to vector<8x128xf32>
    %7 = arith.cmpf oge, %5, %6 : vector<8x128xf32>
    %cst_6 = arith.constant 2.000000e-01 : f32
    %8 = vector.broadcast %cst_6 : f32 to vector<8x128xf32>
    %9 = arith.mulf %8, %5 : vector<8x128xf32>
    %10 = arith.select %7, %5, %9 : vector<8x128xi1>, vector<8x128xf32>
    %c0_7 = arith.constant 0 : index
    %c0_8 = arith.constant 0 : index
    %11 = vector.load %arg3[%c0_7, %c0_8] : memref<128x128xf32, #tpu.memory_space<vmem>>, vector<128x128xf32>
    %cst_9 = arith.constant dense<0.000000e+00> : vector<8x128xf32>
    %12 = tpu.matmul %10, %11, %cst_9 {dimension_numbers = #tpu.dot_dimension_numbers<[1], [0], [0], [1], [0, 0, 1, 1], [], []>} : vector<8x128xf32>, vector<128x128xf32>, vector<8x128xf32> -> vector<8x128xf32>
    %c0_10 = arith.constant 0 : index
    %c0_11 = arith.constant 0 : index
    %13 = vector.load %arg4[%c0_10, %c0_11] : memref<1x128xf32, #tpu.memory_space<vmem>>, vector<1x128xf32>
    %14 = vector.broadcast %13 : vector<1x128xf32> to vector<8x128xf32>
    %15 = arith.addf %12, %14 : vector<8x128xf32>
    %cst_12 = arith.constant 0.000000e+00 : f32
    %16 = vector.broadcast %cst_12 : f32 to vector<8x128xf32>
    %17 = arith.cmpf oge, %15, %16 : vector<8x128xf32>
    %cst_13 = arith.constant 2.000000e-01 : f32
    %18 = vector.broadcast %cst_13 : f32 to vector<8x128xf32>
    %19 = arith.mulf %18, %15 : vector<8x128xf32>
    %20 = arith.select %17, %15, %19 : vector<8x128xi1>, vector<8x128xf32>
    %c0_14 = arith.constant 0 : index
    %c0_15 = arith.constant 0 : index
    %21 = vector.load %arg5[%c0_14, %c0_15] : memref<128x128xf32, #tpu.memory_space<vmem>>, vector<128x128xf32>
    %cst_16 = arith.constant dense<0.000000e+00> : vector<8x128xf32>
    %22 = tpu.matmul %20, %21, %cst_16 {dimension_numbers = #tpu.dot_dimension_numbers<[1], [0], [0], [1], [0, 0, 1, 1], [], []>} : vector<8x128xf32>, vector<128x128xf32>, vector<8x128xf32> -> vector<8x128xf32>
    %c0_17 = arith.constant 0 : index
    %c0_18 = arith.constant 0 : index
    %23 = vector.load %arg6[%c0_17, %c0_18] : memref<1x128xf32, #tpu.memory_space<vmem>>, vector<1x128xf32>
    %24 = vector.broadcast %23 : vector<1x128xf32> to vector<8x128xf32>
    %25 = arith.addf %22, %24 : vector<8x128xf32>
    %cst_19 = arith.constant 0.000000e+00 : f32
    %26 = vector.broadcast %cst_19 : f32 to vector<8x128xf32>
    %27 = arith.cmpf oge, %25, %26 : vector<8x128xf32>
    %cst_20 = arith.constant 2.000000e-01 : f32
    %28 = vector.broadcast %cst_20 : f32 to vector<8x128xf32>
    %29 = arith.mulf %28, %25 : vector<8x128xf32>
    %30 = arith.select %27, %25, %29 : vector<8x128xi1>, vector<8x128xf32>
    %c0_21 = arith.constant 0 : index
    %c0_22 = arith.constant 0 : index
    %31 = vector.load %arg7[%c0_21, %c0_22] : memref<128x128xf32, #tpu.memory_space<vmem>>, vector<128x128xf32>
    %cst_23 = arith.constant dense<0.000000e+00> : vector<8x128xf32>
    %32 = tpu.matmul %30, %31, %cst_23 {dimension_numbers = #tpu.dot_dimension_numbers<[1], [0], [0], [1], [0, 0, 1, 1], [], []>} : vector<8x128xf32>, vector<128x128xf32>, vector<8x128xf32> -> vector<8x128xf32>
    %c0_24 = arith.constant 0 : index
    %c0_25 = arith.constant 0 : index
    %33 = vector.load %arg8[%c0_24, %c0_25] : memref<1x128xf32, #tpu.memory_space<vmem>>, vector<1x128xf32>
    %34 = vector.broadcast %33 : vector<1x128xf32> to vector<8x128xf32>
    %35 = arith.addf %32, %34 : vector<8x128xf32>
    %c0_26 = arith.constant 0 : index
    %c0_27 = arith.constant 0 : index
    %36 = vector.load %arg9[%c0_26, %c0_27] : memref<8x128xf32, #tpu.memory_space<vmem>>, vector<8x128xf32>
    tpu.vector_store %arg9[%c0_26, %c0_27], %35 {strides = array<i32>} : memref<8x128xf32, #tpu.memory_space<vmem>>, vector<8x128xf32>,
    return
  }
}

</mosaic_0001>

<bundles_post_ra>
// kernel: tpu_custom_call.1
= control target key start
LH: loop header
LB: loop body
LE: loop exit
PB: predicated region body
PF: predicated region fallthrough
CT: control target
= control target key end

     0   :  { %14 = vsyncpa [#allocation3], 0  ;;  %s988_s0 = inlined_call_operand.hbm [shape: f32[8,64], index: 0, kind: input, shape index: {}]   ;;  %s989_s1 = inlined_call_operand.hbm [shape: f32[64,128], index: 1, kind: input, shape index: {}]   ;;  %s990_s2 = inlined_call_operand.vmem [shape: f32[1,128], index: 2, kind: input, shape index: {}]   ;;  %s991_s3 = inlined_call_operand.hbm [shape: f32[128,128], index: 3, kind: input, shape index: {}]   ;;  %s992_s4 = inlined_call_operand.vmem [shape: f32[1,128], index: 4, kind: input, shape index: {}]   ;;  %s993_s5 = inlined_call_operand.hbm [shape: f32[128,128], index: 5, kind: input, shape index: {}]   ;;  %s994_s6 = inlined_call_operand.vmem [shape: f32[1,128], index: 6, kind: input, shape index: {}]   ;;  %s995_s7 = inlined_call_operand.hbm [shape: f32[128,128], index: 7, kind: input, shape index: {}]   ;;  %s996_s8 = inlined_call_operand.vmem [shape: f32[1,128], index: 8, kind: input, shape index: {}]   ;;  %s997_s9 = inlined_call_operand.hbm [shape: f32[8,128], index: 9, kind: output, shape index: {}]  }
   0x1   :  { %15 = vsyncpa [#allocation6], 0 }
   0x2   :  { %16 = vsyncpa [#allocation9], 0 }
   0x3   :  { %17 = vsyncpa [#allocation4], 0  ;;  %s822_s30 = smov [#allocation5]  }
   0x4   :  { %s33_s10 = sshll.u32 %s822_s30, 4  ;;  %s34_s10 = int_to_ptr.vmem [resolvable:$true] %s33_s10 }
   0x5   :  { %s702_s11 = scalar_lea.vmem %s34_s10, 1024  ;;  %p707_p1 = scmp.lt.s32.totalorder %s34_s10, %s34_s10 }
   0x6   :  { %p703_p0 = scmp.ne.s32.totalorder %s34_s10, %s702_s11  ;;  %p708_p2 = scmp.lt.s32.totalorder %s702_s11, %s702_s11 }
   0x8   :  { %p709_p3 = por %p708_p2, %p707_p1 }
   0xa   :  { %p710_p4 = pnand %p709_p3, %p703_p0 }
   0xc   :  { %713 = shalt.err (!%p710_p4)
}
   0xd   :  { %s823_s12 = smov 128   ;;  %s824_s13 = smov 8  }
   0xe   :  { %39 = dma.hbm_to_vmem [thread:$0]  %s989_s1, 1024, %s34_s10, [#allocation6], %s823_s12, %s823_s12, %s824_s13  }
   0xf   :  { %s825_s16 = smov [#allocation8]   ;;  %s826_s18 = smov [#allocation2]  }
  0x10   :  { %s61_s17 = sshll.u32 %s825_s16, 4  ;;  %s24_s19 = sshll.u32 %s826_s18, 4  ;;  %s62_s17 = int_to_ptr.vmem [resolvable:$true] %s61_s17  ;;  %s25_s19 = int_to_ptr.vmem [resolvable:$true] %s24_s19 }
  0x11   :  { %s722_s20 = scalar_lea.vmem %s62_s17, 2048  ;;  %p727_p6 = scmp.lt.s32.totalorder %s62_s17, %s62_s17 }
  0x12   :  { %p723_p5 = scmp.ne.s32.totalorder %s62_s17, %s722_s20  ;;  %p728_p7 = scmp.lt.s32.totalorder %s722_s20, %s722_s20 }
  0x14   :  { %p729_p8 = por %p728_p7, %p727_p6 }
  0x16   :  { %p730_p9 = pnand %p729_p8, %p723_p5 }
  0x18   :  { %733 = shalt.err (!%p730_p9)
}
  0x19   :  { %67 = dma.hbm_to_vmem [thread:$0]  %s993_s5, 2048, %s62_s17, [#allocation9], %s823_s12, %s823_s12, %s824_s13  }
  0x1a   :  { %s742_s1 = scalar_lea.vmem %s25_s19, 128  ;;  %p747_p11 = scmp.lt.s32.totalorder %s25_s19, %s25_s19 }
  0x1b   :  { %p743_p10 = scmp.ne.s32.totalorder %s25_s19, %s742_s1  ;;  %p748_p12 = scmp.lt.s32.totalorder %s742_s1, %s742_s1 }
  0x1d   :  { %p749_p13 = por %p748_p12, %p747_p11 }
  0x1f   :  { %p750_p0 = pnand %p749_p13, %p743_p10 }
  0x21   :  { %753 = shalt.err (!%p750_p0)
}
  0x22   :  { %27 = dma.hbm_to_vmem [thread:$0]  %s988_s0, 128, %s25_s19, [#allocation3]  }
  0x23   :  { %s827_s25 = smov [#allocation7]   ;;  %s828_s27 = smov [#allocation10]  }
  0x24   :  { %s47_s26 = sshll.u32 %s827_s25, 4  ;;  %s75_s28 = sshll.u32 %s828_s27, 4  ;;  %s48_s26 = int_to_ptr.vmem [resolvable:$true] %s47_s26  ;;  %s76_s28 = int_to_ptr.vmem [resolvable:$true] %s75_s28 }
  0x25   :  { %s762_s29 = scalar_lea.vmem %s48_s26, 2048  ;;  %p767_p2 = scmp.lt.s32.totalorder %s48_s26, %s48_s26 }
  0x26   :  { %p763_p1 = scmp.ne.s32.totalorder %s48_s26, %s762_s29  ;;  %p768_p3 = scmp.lt.s32.totalorder %s762_s29, %s762_s29 }
  0x28   :  { %p769_p4 = por %p768_p3, %p767_p2 }
  0x2a   :  { %p770_p5 = pnand %p769_p4, %p763_p1 }
  0x2c   :  { %773 = shalt.err (!%p770_p5)
}
  0x2d   :  { %53 = dma.hbm_to_vmem [thread:$0]  %s991_s3, 2048, %s48_s26, [#allocation6], %s823_s12, %s823_s12, %s824_s13  }
  0x2e   :  { %s782_s0 = scalar_lea.vmem %s76_s28, 2048  ;;  %p787_p7 = scmp.lt.s32.totalorder %s76_s28, %s76_s28 }
  0x2f   :  { %p783_p6 = scmp.ne.s32.totalorder %s76_s28, %s782_s0  ;;  %p788_p8 = scmp.lt.s32.totalorder %s782_s0, %s782_s0 }
  0x31   :  { %p789_p9 = por %p788_p8, %p787_p7 }
  0x33   :  { %p790_p10 = pnand %p789_p9, %p783_p6 }
  0x35   :  { %793 = shalt.err (!%p790_p10)
}
  0x36   :  { %81 = dma.hbm_to_vmem [thread:$0]  %s995_s7, 2048, %s76_s28, [#allocation9], %s823_s12, %s823_s12, %s824_s13  }
  0x37   :  { %814 = dma.done.wait [#allocation3], 128  }
  0x38   :  { %815 = vsyncadd [#allocation3], 4294967168 }
  0x39   :  { %816 = dma.done.wait [#allocation6], 3072  }
  0x3a   :  { %817 = vsyncadd [#allocation6], 4294964224 }
  0x3b   :  { %818 = dma.done.wait [#allocation9], 4096  }
  0x3c   :  { %819 = vsyncadd [#allocation9], 4294963200  ;;  %v829_v0 = vmov 0.0   ;;  %vm830_vm0 = vmmov 0   ;;  %v107_v1 = vld [vmem:[#allocation5 + $0x38] sm:$0xff]  ;;  %v106_v2 = vld [vmem:[#allocation5 + $0x30] sm:$0xff] }
  0x3d   :  { %560 = vmatprep.subr.mxu0 %v829_v0  ;;  %576 = vmatprep.mubr.msk.f32.mxu0 %vm830_vm0, %v829_v0  ;;  %v105_v3 = vld [vmem:[#allocation5 + $0x28] sm:$0xff]  ;;  %v207_v4 = vld [vmem:[#allocation7 + $0x78] sm:$0xff]  ;;  %v206_v5 = vld [vmem:[#allocation7 + $0x70] sm:$0xff]  ;;  %vm115_vm1 = vcmask 523264   ;;  %s831_s16 = smov [#allocation11]  }
  0x3e   :  { %579 = vmatprep.subr.mxu1 %v829_v0  ;;  %611 = vmatprep.mubr.msk.f32.mxu1 %vm830_vm0, %v829_v0  ;;  %v104_v6 = vld [vmem:[#allocation5 + $0x20] sm:$0xff]  ;;  %v205_v7 = vld [vmem:[#allocation7 + $0x68] sm:$0xff]  ;;  %v103_v8 = vld [vmem:[#allocation5 + $0x18] sm:$0xff]  ;;  %s484_s17 = sshll.u32 %s831_s16, 4  ;;  %s485_s17 = int_to_ptr.vmem [resolvable:$true] %s484_s17 }
  0x3f   :  { %561 = vmatpush3.msra.mxu0 %v107_v1  ;;  %580 = vmatpush3.msra.mxu1 %v207_v4  ;;  %v204_v9 = vld [vmem:[#allocation7 + $0x60] sm:$0xff]  ;;  %v102_v10 = vld [vmem:[#allocation5 + $0x10] sm:$0xff]  ;;  %v203_v11 = vld [vmem:[#allocation7 + $0x58] sm:$0xff]  ;;  %s794_s18 = scalar_lea.vmem %s485_s17, 128  ;;  %p799_p12 = scmp.lt.s32.totalorder %s485_s17, %s485_s17 }
  0x40   :  { %562 = vmatprep.subr.mxu0 %v829_v0  ;;  %581 = vmatprep.subr.mxu1 %v829_v0  ;;  %v101_v12 = vld [vmem:[#allocation5 + $0x8] sm:$0xff]  ;;  %v202_v13 = vld [vmem:[#allocation7 + $0x50] sm:$0xff]  ;;  %v100_v14 = vld [vmem:[#allocation5] sm:$0xff]  ;;  %p795_p11 = scmp.ne.s32.totalorder %s485_s17, %s794_s18  ;;  %p800_p13 = scmp.lt.s32.totalorder %s794_s18, %s794_s18 }
  0x41   :  { %563 = vmatpush3.msra.mxu0 %v106_v2  ;;  %582 = vmatpush3.msra.mxu1 %v206_v5  ;;  %v99_v15 = vld [vmem:[#allocation2] sm:$0xff]  ;;  %v201_v16 = vld [vmem:[#allocation7 + $0x48] sm:$0xff]  ;;  %v200_v17 = vld [vmem:[#allocation7 + $0x40] sm:$0xff] }
  0x42   :  { %564 = vmatprep.subr.mxu0 %v829_v0  ;;  %583 = vmatprep.subr.mxu1 %v829_v0  ;;  %v199_v18 = vld [vmem:[#allocation7 + $0x38] sm:$0xff]  ;;  %v198_v19 = vld [vmem:[#allocation7 + $0x30] sm:$0xff]  ;;  %v197_v20 = vld [vmem:[#allocation7 + $0x28] sm:$0xff]  ;;  %p801_p0 = por %p800_p13, %p799_p12 }
  0x43   :  { %565 = vmatpush3.msra.mxu0 %v105_v3  ;;  %584 = vmatpush3.msra.mxu1 %v205_v7  ;;  %v196_v21 = vld [vmem:[#allocation7 + $0x20] sm:$0xff]  ;;  %v195_v22 = vld [vmem:[#allocation7 + $0x18] sm:$0xff]  ;;  %v194_v23 = vld [vmem:[#allocation7 + $0x10] sm:$0xff] }
  0x44   :  { %566 = vmatprep.subr.mxu0 %v829_v0  ;;  %585 = vmatprep.subr.mxu1 %v829_v0  ;;  %v193_v24 = vld [vmem:[#allocation7 + $0x8] sm:$0xff]  ;;  %v192_v25 = vld [vmem:[#allocation7] sm:$0xff]  ;;  %v303_v26 = vld [vmem:[#allocation8 + $0x78] sm:$0xff]  ;;  %p802_p1 = pnand %p801_p0, %p795_p11 }
  0x45   :  { %567 = vmatpush3.msra.mxu0 %v104_v6  ;;  %586 = vmatpush3.msra.mxu1 %v204_v9  ;;  %v302_v27 = vld [vmem:[#allocation8 + $0x70] sm:$0xff]  ;;  %v301_v28 = vld [vmem:[#allocation8 + $0x68] sm:$0xff]  ;;  %v300_v29 = vld [vmem:[#allocation8 + $0x60] sm:$0xff] }
  0x46   :  { %568 = vmatprep.subr.mxu0 %v829_v0  ;;  %587 = vmatprep.subr.mxu1 %v829_v0  ;;  %v299_v30 = vld [vmem:[#allocation8 + $0x58] sm:$0xff]  ;;  %v298_v31 = vld [vmem:[#allocation8 + $0x50] sm:$0xff]  ;;  %v297_v32 = vld [vmem:[#allocation8 + $0x48] sm:$0xff] }
  0x47   :  { %569 = vmatpush3.msra.mxu0 %v103_v8  ;;  %588 = vmatpush3.msra.mxu1 %v203_v11  ;;  %v296_v33 = vld [vmem:[#allocation8 + $0x40] sm:$0xff]  ;;  %v295_v34 = vld [vmem:[#allocation8 + $0x38] sm:$0xff]  ;;  %v294_v35 = vld [vmem:[#allocation8 + $0x30] sm:$0xff] }
  0x48   :  { %570 = vmatprep.subr.mxu0 %v829_v0  ;;  %589 = vmatprep.subr.mxu1 %v829_v0  ;;  %v293_v36 = vld [vmem:[#allocation8 + $0x28] sm:$0xff]  ;;  %v292_v37 = vld [vmem:[#allocation8 + $0x20] sm:$0xff]  ;;  %v291_v38 = vld [vmem:[#allocation8 + $0x18] sm:$0xff] }
  0x49   :  { %571 = vmatpush3.msra.mxu0 %v102_v10  ;;  %590 = vmatpush3.msra.mxu1 %v202_v13  ;;  %v495_v39 = vld [vmem:[%s990_s2] ss:$0 sm:$0xff]  ;;  %v290_v45 = vld [vmem:[#allocation8 + $0x10] sm:$0xff]  ;;  %v289_v46 = vld [vmem:[#allocation8 + $0x8] sm:$0xff] }
  0x4a   :  { %572 = vmatprep.subr.mxu0 %v829_v0  ;;  %591 = vmatprep.subr.mxu1 %v829_v0  ;;  %v288_v47 = vld [vmem:[#allocation8] sm:$0xff]  ;;  %v399_v48 = vld [vmem:[#allocation10 + $0x78] sm:$0xff]  ;;  %v398_v49 = vld [vmem:[#allocation10 + $0x70] sm:$0xff] }
  0x4b   :  { %573 = vmatpush3.msra.mxu0 %v101_v12  ;;  %592 = vmatpush3.msra.mxu1 %v201_v16  ;;  %v397_v50 = vld [vmem:[#allocation10 + $0x68] sm:$0xff]  ;;  %v396_v51 = vld [vmem:[#allocation10 + $0x60] sm:$0xff]  ;;  %v395_v52 = vld [vmem:[#allocation10 + $0x58] sm:$0xff] }
  0x4c   :  { %574 = vmatprep.subr.mxu0 %v829_v0  ;;  %593 = vmatprep.subr.mxu1 %v829_v0  ;;  %v394_v53 = vld [vmem:[#allocation10 + $0x50] sm:$0xff]  ;;  %v393_v54 = vld [vmem:[#allocation10 + $0x48] sm:$0xff]  ;;  %v392_v55 = vld [vmem:[#allocation10 + $0x40] sm:$0xff] }
  0x4d   :  { %575 = vmatpush3.msra.mxu0 %v100_v14  ;;  %594 = vmatpush3.msra.mxu1 %v200_v17  ;;  %v391_v56 = vld [vmem:[#allocation10 + $0x38] sm:$0xff]  ;;  %v390_v57 = vld [vmem:[#allocation10 + $0x30] sm:$0xff]  ;;  %v389_v58 = vld [vmem:[#allocation10 + $0x28] sm:$0xff] }
  0x4e   :  { %577 = vmatmul.mubr.msk.f32.vlgmr.msra.gmra.mxu0 %vm115_vm1, %v99_v15  ;;  %614 = vmatprep.subr.mxu0 %v829_v0  ;;  %v388_v59 = vld [vmem:[#allocation10 + $0x20] sm:$0xff]  ;;  %v387_v60 = vld [vmem:[#allocation10 + $0x18] sm:$0xff]  ;;  %v386_v4 = vld [vmem:[#allocation10 + $0x10] sm:$0xff] }
  0x4f   :  { %646 = vmatprep.mubr.msk.f32.mxu0 %vm830_vm0, %v829_v0  ;;  %595 = vmatprep.subr.mxu1 %v829_v0  ;;  %v497_v61 = vld [vmem:[%s992_s4] ss:$0 sm:$0xff]  ;;  %v385_v5 = vld [vmem:[#allocation10 + $0x8] sm:$0xff]  ;;  %v384_v6 = vld [vmem:[#allocation10] sm:$0xff] }
  0x50   :  { %596 = vmatpush3.msra.mxu1 %v199_v18  ;;  %615 = vmatpush3.msra.mxu0 %v303_v26  ;;  %v498_v7 = vld [vmem:[%s994_s6] ss:$0 sm:$0xff] }
  0x51   :  { %597 = vmatprep.subr.mxu1 %v829_v0  ;;  %616 = vmatprep.subr.mxu0 %v829_v0  ;;  %v499_v13 = vld [vmem:[%s996_s8] ss:$0 sm:$0xff] }
  0x52   :  { %598 = vmatpush3.msra.mxu1 %v198_v19  ;;  %617 = vmatpush3.msra.mxu0 %v302_v27 }
  0x53   :  { %599 = vmatprep.subr.mxu1 %v829_v0  ;;  %618 = vmatprep.subr.mxu0 %v829_v0 }
  0x54   :  { %600 = vmatpush3.msra.mxu1 %v197_v20  ;;  %619 = vmatpush3.msra.mxu0 %v301_v28 }
  0x55   :  { %601 = vmatprep.subr.mxu1 %v829_v0  ;;  %620 = vmatprep.subr.mxu0 %v829_v0 }
  0x56   :  { %602 = vmatpush3.msra.mxu1 %v196_v21  ;;  %621 = vmatpush3.msra.mxu0 %v300_v29 }
  0x57   :  { %603 = vmatprep.subr.mxu1 %v829_v0  ;;  %622 = vmatprep.subr.mxu0 %v829_v0 }
  0x58   :  { %604 = vmatpush3.msra.mxu1 %v195_v22  ;;  %623 = vmatpush3.msra.mxu0 %v299_v30 }
  0x59   :  { %605 = vmatprep.subr.mxu1 %v829_v0  ;;  %624 = vmatprep.subr.mxu0 %v829_v0 }
  0x5a   :  { %606 = vmatpush3.msra.mxu1 %v194_v23  ;;  %625 = vmatpush3.msra.mxu0 %v298_v31 }
  0x5b   :  { %607 = vmatprep.subr.mxu1 %v829_v0  ;;  %626 = vmatprep.subr.mxu0 %v829_v0 }
  0x5c   :  { %608 = vmatpush3.msra.mxu1 %v193_v24  ;;  %627 = vmatpush3.msra.mxu0 %v297_v32 }
  0x5d   :  { %609 = vmatprep.subr.mxu1 %v829_v0  ;;  %628 = vmatprep.subr.mxu0 %v829_v0 }
  0x5e   :  { %610 = vmatpush3.msra.mxu1 %v192_v25  ;;  %629 = vmatpush3.msra.mxu0 %v296_v33 }
  0x5f   :  { %649 = vmatprep.subr.mxu1 %v829_v0  ;;  %630 = vmatprep.subr.mxu0 %v829_v0 }
  0x60   :  { %631 = vmatpush3.msra.mxu0 %v295_v34 }
  0x61   :  { %632 = vmatprep.subr.mxu0 %v829_v0 }
  0x62   :  { %633 = vmatpush3.msra.mxu0 %v294_v35 }
  0x63   :  { %634 = vmatprep.subr.mxu0 %v829_v0 }
  0x64   :  { %635 = vmatpush3.msra.mxu0 %v293_v36 }
  0x65   :  { %636 = vmatprep.subr.mxu0 %v829_v0 }
  0x66   :  { %637 = vmatpush3.msra.mxu0 %v292_v37 }
  0x67   :  { %638 = vmatprep.subr.mxu0 %v829_v0 }
  0x68   :  { %639 = vmatpush3.msra.mxu0 %v291_v38 }
  0x69   :  { %640 = vmatprep.subr.mxu0 %v829_v0 }
  0x6a   :  { %641 = vmatpush3.msra.mxu0 %v290_v45 }
  0x6b   :  { %642 = vmatprep.subr.mxu0 %v829_v0 }
  0x6c   :  { %643 = vmatpush3.msra.mxu0 %v289_v46 }
  0x6d   :  { %644 = vmatprep.subr.mxu0 %v829_v0 }
  0x6e   :  { %645 = vmatpush3.msra.mxu0 %v288_v47 }
 0x10e   :  { %v185_v40 = vpop.f32.mrf.mxu0 }
 0x10f   :  { %v186_v41 = vadd.f32 %v495_v39, %v185_v40 }
 0x110   :  { %v578_v42 = vpop.f32.mrf.mxu0 }
 0x111   :  { %v190_v43 = vmul.f32 0.2, %v186_v41  ;;  %vm189_vm2 = vcmp.ge.f32.partialorder %v186_v41, 0.0 }
 0x113   :  { %v191_v44 = vsel %vm189_vm2, %v186_v41, %v190_v43 }
 0x114   :  { %612 = vmatmul.mubr.f32.vlgmr.msra.gmra.mxu1 %v191_v44 }
 0x115   :  { %681 = vmatprep.mubr.msk.f32.mxu1 %vm830_vm0, %v829_v0  ;;  %650 = vmatpush3.msra.mxu1 %v399_v48 }
 0x116   :  { %651 = vmatprep.subr.mxu1 %v829_v0 }
 0x117   :  { %652 = vmatpush3.msra.mxu1 %v398_v49 }
 0x118   :  { %653 = vmatprep.subr.mxu1 %v829_v0 }
 0x119   :  { %654 = vmatpush3.msra.mxu1 %v397_v50 }
 0x11a   :  { %655 = vmatprep.subr.mxu1 %v829_v0 }
 0x11b   :  { %656 = vmatpush3.msra.mxu1 %v396_v51 }
 0x11c   :  { %657 = vmatprep.subr.mxu1 %v829_v0 }
 0x11d   :  { %658 = vmatpush3.msra.mxu1 %v395_v52 }
 0x11e   :  { %659 = vmatprep.subr.mxu1 %v829_v0 }
 0x11f   :  { %660 = vmatpush3.msra.mxu1 %v394_v53 }
 0x120   :  { %661 = vmatprep.subr.mxu1 %v829_v0 }
 0x121   :  { %662 = vmatpush3.msra.mxu1 %v393_v54 }
 0x122   :  { %663 = vmatprep.subr.mxu1 %v829_v0 }
 0x123   :  { %664 = vmatpush3.msra.mxu1 %v392_v55 }
 0x124   :  { %665 = vmatprep.subr.mxu1 %v829_v0 }
 0x125   :  { %666 = vmatpush3.msra.mxu1 %v391_v56 }
 0x126   :  { %667 = vmatprep.subr.mxu1 %v829_v0 }
 0x127   :  { %668 = vmatpush3.msra.mxu1 %v390_v57 }
 0x128   :  { %669 = vmatprep.subr.mxu1 %v829_v0 }
 0x129   :  { %670 = vmatpush3.msra.mxu1 %v389_v58 }
 0x12a   :  { %671 = vmatprep.subr.mxu1 %v829_v0 }
 0x12b   :  { %672 = vmatpush3.msra.mxu1 %v388_v59 }
 0x12c   :  { %673 = vmatprep.subr.mxu1 %v829_v0 }
 0x12d   :  { %674 = vmatpush3.msra.mxu1 %v387_v60 }
 0x12e   :  { %675 = vmatprep.subr.mxu1 %v829_v0 }
 0x12f   :  { %676 = vmatpush3.msra.mxu1 %v386_v4 }
 0x130   :  { %677 = vmatprep.subr.mxu1 %v829_v0 }
 0x131   :  { %678 = vmatpush3.msra.mxu1 %v385_v5 }
 0x132   :  { %679 = vmatprep.subr.mxu1 %v829_v0 }
 0x133   :  { %680 = vmatpush3.msra.mxu1 %v384_v6 }
 0x1d4   :  { %v281_v62 = vpop.f32.mrf.mxu1 }
 0x1d5   :  { %v282_v63 = vadd.f32 %v497_v61, %v281_v62 }
 0x1d6   :  { %v613_v1 = vpop.f32.mrf.mxu1 }
 0x1d7   :  { %vm285_vm3 = vcmp.ge.f32.partialorder %v282_v63, 0.0  ;;  %v286_v2 = vmul.f32 0.2, %v282_v63 }
 0x1d9   :  { %v287_v3 = vsel %vm285_vm3, %v282_v63, %v286_v2 }
 0x1da   :  { %647 = vmatmul.mubr.f32.vlgmr.msra.gmra.mxu0 %v287_v3 }
 0x29a   :  { %v377_v8 = vpop.f32.mrf.mxu0 }
 0x29b   :  { %v378_v9 = vadd.f32 %v498_v7, %v377_v8 }
 0x29c   :  { %v648_v10 = vpop.f32.mrf.mxu0 }
 0x29d   :  { %vm381_vm4 = vcmp.ge.f32.partialorder %v378_v9, 0.0  ;;  %v382_v11 = vmul.f32 0.2, %v378_v9 }
 0x29f   :  { %v383_v12 = vsel %vm381_vm4, %v378_v9, %v382_v11 }
 0x2a0   :  { %682 = vmatmul.mubr.f32.vlgmr.msra.gmra.mxu1 %v383_v12 }
 0x360   :  { %v473_v14 = vpop.f32.mrf.mxu1 }
 0x361   :  { %v474_v0 = vadd.f32 %v499_v13, %v473_v14 }
 0x362   :  { %v683_v15 = vpop.f32.mrf.mxu1 }
 0x363   :  { %477 = vst [vmem:[#allocation11] sm:$0xff] %v474_v0 }
 0x364   :  { %805 = shalt.err (!%p802_p1)
}
 0x365   :  { %487 = dma.vmem_to_hbm [thread:$0]  %s485_s17, 128, %s997_s9, [#allocation4]  }
 0x366   :  { %820 = dma.done.wait [#allocation4], 128  }
 0x367   :  { %821 = vsyncadd [#allocation4], 4294967168 }
 0x368   :  { %491 = vsyncpa [#allocation3], 1 }
 0x369   :  { %492 = vsyncpa [#allocation6], 1 }
 0x36a   :  { %493 = vsyncpa [#allocation9], 1 }
 0x36b   :  { %494 = vsyncpa [#allocation4], 1 }

</bundles_post_ra>
